<compile_context>
chip_gen: v5e
topology: v5e:2x2
jax: 0.10.0
libtpu: 0.0.40
codegen_flags: <defaults>
</compile_context>

<pallas_src>
import jax
import jax.numpy as jnp
from jax.experimental import pallas as pl
from jax.experimental.pallas import tpu as pltpu

_LANES = 128                       # vreg lane width
_SUBLANES = 8                      # vreg sublane count (32-bit)
_MAX_BLOCK_BYTES = 4 * 1024 * 1024  # 4 MiB per block buffer
_TARGET_GRID_STEPS = 4             # keep >= 2 (ideally 4) steps for v7x megacore
_VMEM_LIMIT_BYTES = 32 * 1024 * 1024  # 2 in + 2 out double-buffered 4 MiB = 16 MiB


def _h_swish_kernel(x_ref, o_ref):
    """Elementwise h_swish on one (block_rows, 128) tile."""
    xf = x_ref[...].astype(jnp.float32)
    y = xf * (jnp.clip(xf + 3.0, 0.0, 6.0) * (1.0 / 6.0))
    o_ref[...] = y.astype(o_ref.dtype)


def _pack_rows(dtype):
    """Sublane packing of `dtype`: rows that fill one packed vreg tile."""
    itemsize = jnp.dtype(dtype).itemsize
    if itemsize >= 4:
        return _SUBLANES
    return _SUBLANES * (4 // itemsize)   # bf16/f16 -> 16, int8/fp8 -> 32


def _round_up(a, b):
    return pl.cdiv(a, b) * b


def h_swish(x):
    """h_swish(x) = x * ReLU6(x + 3) / 6, arbitrary input shape."""
    orig_shape = x.shape
    n = x.size
    if n == 0:
        return x

    dtype = x.dtype
    pack = _pack_rows(dtype)

    # Tiny inputs: kernel-launch overhead dominates; plain jnp is faster.
    if n < pack * _LANES:
        xf = x.astype(jnp.float32)
        return (xf * (jnp.clip(xf + 3.0, 0.0, 6.0) * (1.0 / 6.0))).astype(dtype)

    rows = pl.cdiv(n, _LANES)          # lane-dense (rows, 128) layout
    aligned = (n % _LANES == 0)

    if aligned:
        # Free contiguous reshape -- no extra HBM traffic.
        x2d = x.reshape(rows, _LANES)
    else:
        # Only lane padding (to a 128 multiple), never block-granularity padding.
        x2d = jnp.pad(jnp.ravel(x), (0, rows * _LANES - n)).reshape(rows, _LANES)

    # Block rows: as large as the 4 MiB/buffer budget allows, a multiple of the
    # dtype's sublane packing, and small enough that the grid has >= 4 steps
    # (so the "parallel" axis can shard across v7x's 2 TensorCores).
    itemsize = jnp.dtype(dtype).itemsize
    max_rows = max(pack, (_MAX_BLOCK_BYTES // (_LANES * itemsize)) // pack * pack)
    target_rows = _round_up(pl.cdiv(rows, _TARGET_GRID_STEPS), pack)
    block_rows = max(pack, min(max_rows, target_rows))

    grid = (pl.cdiv(rows, block_rows),)   # partial final block handled by Pallas

    out2d = pl.pallas_call(
        _h_swish_kernel,
        out_shape=jax.ShapeDtypeStruct((rows, _LANES), dtype),
        grid_spec=pltpu.PrefetchScalarGridSpec(
            num_scalar_prefetch=0,
            grid=grid,
            in_specs=[pl.BlockSpec((block_rows, _LANES), lambda i: (i, 0))],
            out_specs=pl.BlockSpec((block_rows, _LANES), lambda i: (i, 0)),
        ),
        compiler_params=pltpu.CompilerParams(
            dimension_semantics=("parallel",),      # megacore split on v7x
            vmem_limit_bytes=_VMEM_LIMIT_BYTES,
        ),
    )(x2d)

    if aligned:
        return out2d.reshape(orig_shape)
    return out2d.reshape(rows * _LANES)[:n].reshape(orig_shape)


def _h_swish_ref(x):
    """Pure-JAX reference matching the PyTorch module."""
    return x * jnp.clip(x + 3.0, 0.0, 6.0) / 6.0


if __name__ == "__main__":
    key = jax.random.PRNGKey(0)
    k0, k1, k2, k3 = jax.random.split(key, 4)

    # 1) NCHW activation like the SSD module: lane-aligned fast path, 2-step grid.
    x = jax.random.normal(k0, (2, 4, 16, 16), jnp.float32) * 4.0  # hits both clip edges
    y = jax.jit(h_swish)(x)
    jax.block_until_ready(y)
    assert y.shape == x.shape, y.shape
    assert jnp.allclose(y, _h_swish_ref(x), atol=1e-6, rtol=1e-6)

    # 2) Unaligned size (1155 elems): lane-pad path + partial final block.
    x2 = jax.random.normal(k1, (3, 5, 7, 11), jnp.float32) * 4.0
    y2 = jax.jit(h_swish)(x2)
    jax.block_until_ready(y2)
    assert y2.shape == x2.shape, y2.shape
    assert jnp.allclose(y2, _h_swish_ref(x2), atol=1e-6, rtol=1e-6)

    # 3) bf16 input: exercises the dtype-aware (16,128) sublane packing.
    x3 = (jax.random.normal(k2, (2, 8, 16, 16), jnp.float32) * 4.0).astype(jnp.bfloat16)
    y3 = jax.jit(h_swish)(x3)
    jax.block_until_ready(y3)
    assert y3.shape == x3.shape, y3.shape
    assert jnp.allclose(y3.astype(jnp.float32),
                        _h_swish_ref(x3.astype(jnp.float32)),
                        atol=0.1, rtol=0.05)

    # 4) Tiny input (105 elems): jnp fallback path.
    x4 = jax.random.normal(k3, (3, 5, 7), jnp.float32) * 4.0
    y4 = jax.jit(h_swish)(x4)
    jax.block_until_ready(y4)
    assert y4.shape == x4.shape, y4.shape
    assert jnp.allclose(y4, _h_swish_ref(x4), atol=1e-6, rtol=1e-6)

    print("KERNEL_OK")
</pallas_src>

<mosaic_0001>
module attributes {stable_mosaic.version = 11 : i64} {
  func.func @_h_swish_kernel(%arg0: i32, %arg1: memref<8x128xf32, #tpu.memory_space<vmem>>, %arg2: memref<8x128xf32, #tpu.memory_space<vmem>>) attributes {dimension_semantics = [#tpu.dimension_semantics<parallel>], iteration_bounds = array<i64: 2>, scalar_prefetch = 0 : i64, scratch_operands = 0 : i64, tpu.core_type = #tpu.core_type<tc>, window_params = [{transform_indices = @transform_0, window_bounds = array<i64: 8, 128>}, {transform_indices = @transform_1, window_bounds = array<i64: 8, 128>}]} {
    %c0 = arith.constant 0 : index
    %c0_0 = arith.constant 0 : index
    %0 = vector.load %arg1[%c0, %c0_0] : memref<8x128xf32, #tpu.memory_space<vmem>>, vector<8x128xf32>
    %cst = arith.constant 3.000000e+00 : f32
    %1 = vector.broadcast %cst : f32 to vector<8x128xf32>
    %2 = arith.addf %0, %1 : vector<8x128xf32>
    %cst_1 = arith.constant 0.000000e+00 : f32
    %cst_2 = arith.constant 6.000000e+00 : f32
    %3 = vector.broadcast %cst_1 : f32 to vector<8x128xf32>
    %4 = arith.maximumf %3, %2 : vector<8x128xf32>
    %5 = vector.broadcast %cst_2 : f32 to vector<8x128xf32>
    %6 = arith.minimumf %5, %4 : vector<8x128xf32>
    %cst_3 = arith.constant 0.166666672 : f32
    %7 = vector.broadcast %cst_3 : f32 to vector<8x128xf32>
    %8 = arith.mulf %6, %7 : vector<8x128xf32>
    %9 = arith.mulf %0, %8 : vector<8x128xf32>
    %c0_4 = arith.constant 0 : index
    %c0_5 = arith.constant 0 : index
    %10 = vector.load %arg2[%c0_4, %c0_5] : memref<8x128xf32, #tpu.memory_space<vmem>>, vector<8x128xf32>
    tpu.vector_store %arg2[%c0_4, %c0_5], %9 {strides = array<i32>} : memref<8x128xf32, #tpu.memory_space<vmem>>, vector<8x128xf32>,
    return
  }
  func.func @transform_0(%arg0: i32) -> (i32, i32) {
    %c0_i32 = arith.constant 0 : i32
    %c0_i32_0 = arith.constant 0 : i32
    return %arg0, %c0_i32 : i32, i32
  }
  func.func @transform_1(%arg0: i32) -> (i32, i32) {
    %c0_i32 = arith.constant 0 : i32
    %c0_i32_0 = arith.constant 0 : i32
    return %arg0, %c0_i32 : i32, i32
  }
}

</mosaic_0001>

<bundles_post_ra>
// kernel: h_swish.1
= control target key start
LH: loop header
LB: loop body
LE: loop exit
PB: predicated region body
PF: predicated region fallthrough
CT: control target
= control target key end

     0   :  { %s193_s6 = smov 0   ;;  %s213_s0 = inlined_call_operand.vmem [shape: f32[16,128], index: 0, kind: input, shape index: {}]   ;;  %s214_s1 = inlined_call_operand.vmem [shape: f32[16,128], index: 1, kind: output, shape index: {}]  }
   0x1 LB: > { %s172_s7 = sadd.s32 4294967295, %s195_s6   ;;  %p176_p0 = scmp.ge.s32.totalorder %s195_s6, 1  ;;  %s195_s6 = sphi %s193_s6, %s11_s6  }
   0x2   : > { %p86_p1 = scmp.lt.s32.totalorder %s195_s6, 3 }
   0x4   : > { %p87_p2 = pnand %p176_p0, %p86_p1 }
   0x5   : > { %p104_p3 = scmp.lt.s32.totalorder (!%p87_p2), %s172_s7, 1 }
   0x6   : > { %90 = sbr.rel (%p87_p2) target bundleno = 26 (0x1a), region = 24 }
   0xb   : > { %s216_s7 = smov (!%p104_p3, %s172_s7), 1 }
   0xc   : > { %s177_s8 = sshll.u32 %s216_s7, 3 }
   0xd   : > { %s107_s11 = scalar_lea.vmem %s213_s0, %s177_s8  ;;  %s111_s14 = scalar_lea.vmem %s214_s1, %s177_s8 }
   0xe   : > { %v112_v0 = vld [vmem:[%s107_s11] sm:$0xff] }
   0xf   : > { %v113_v1 = vadd.f32 3.0, %v112_v0 }
  0x11   : > { %v114_v2 = vmax.f32 %v113_v1, 0.0 }
  0x13   : > { %v115_v3 = vmin.f32 %v114_v2, 6.0 }
  0x15   : > { %v116_v4 = vmul.f32 0.16666667, %v115_v3 }
  0x17   : > { %v117_v5 = vmul.f32 %v116_v4, %v112_v0 }
  0x19   : > { %118 = vst [vmem:[%s111_s14] sm:$0xff] %v117_v5 }
  0x1a PF: > { %s11_s6 = sadd.s32 1, %s195_s6  }
  0x1b   : > { %p8_p4 = scmp.ge.s32.totalorder %s11_s6, 4  }
  0x1d   :  { %10 = sbr.rel (!%p8_p4) target bundleno = 1 (0x1), region = 54 }

</bundles_post_ra>
